<compile_context>
chip_gen: v5e
topology: v5e:2x2
jax: 0.10.0
libtpu: 0.0.40
codegen_flags: <defaults>
</compile_context>

<pallas_src>
import functools

import jax
import jax.numpy as jnp
from jax import lax
from jax.experimental import pallas as pl
from jax.experimental.pallas import tpu as pltpu


def _doc_classifier_kernel(x_ref, w_ref, b_ref, o_ref, *, seq_len, emb_dim):
    # x_ref: (tb, S*D), w_ref: (D, Lp), b_ref: (1, Lp), o_ref: (tb, Lp)
    tb = x_ref.shape[0]

    # Mean over the sequence axis, computed as S lane-aligned slice-adds into an
    # f32 accumulator.  Only one (tb, D) slice is live at a time (no full-tile
    # f32 upcast temporary), and D = 384 = 3*128 keeps every slice lane-aligned.
    acc = jnp.zeros((tb, emb_dim), jnp.float32)
    if seq_len <= 32:
        for s in range(seq_len):                                   # unrolled at trace time
            acc = acc + x_ref[:, s * emb_dim:(s + 1) * emb_dim].astype(jnp.float32)
    else:
        def body(s, a):
            start = s * emb_dim
            if emb_dim % 128 == 0:
                start = pl.multiple_of(start, 128)                 # aligned vector loads
            return a + x_ref[:, pl.ds(start, emb_dim)].astype(jnp.float32)
        acc = lax.fori_loop(0, seq_len, body, acc)

    pooled = acc * (1.0 / seq_len)                                 # (tb, D)
    # TODO(synk): training-mode dropout (p=0.1) omitted; eval-mode dropout is identity.
    logits = jnp.dot(pooled, w_ref[...],
                     preferred_element_type=jnp.float32)           # (tb, Lp) on the MXU
    o_ref[...] = logits + b_ref[...]                               # broadcast bias over batch tile


def document_classifier_forward(embeddings, weight, bias, *, batch_tile=None,
                                core_parallel=False):
    """embeddings: (B, S, D) f32 or bf16; weight: (L, D) (nn.Linear layout); bias: (L,)."""
    B, S, D = embeddings.shape
    L = weight.shape[0]

    # Lane-dense output: pad the label dim to a multiple of 128 (unmasked vst).
    Lp = max(128, pl.cdiv(L, 128) * 128)
    itemsize = jnp.dtype(embeddings.dtype).itemsize

    # Generation-aware VMEM budget (64 MiB per TC on v7x, 128 MiB on v5e/v6e).
    try:
        vmem_cap = int(pltpu.get_tpu_info().vmem_capacity_bytes)
    except Exception:
        vmem_cap = 64 * 1024 * 1024                                # conservative fallback
    budget = int(vmem_cap * 0.6)                                   # headroom for compiler scratch

    # Fixed footprint: weight + bias blocks (double-buffered by default, ~0.4 MiB).
    fixed_bytes = 2 * (D * Lp * 4 + Lp * 4)
    # Per-batch-row footprint: double-buffered input + output blocks, plus the
    # in-kernel f32 accumulator and logits intermediates (now budgeted explicitly).
    per_row = 2 * S * D * itemsize + 2 * Lp * 4 + D * 4 + Lp * 4

    if batch_tile is None:
        tb = max(8, ((budget - fixed_bytes) // per_row) // 8 * 8)
        # Keep >= 2 grid steps for large batches so a batch-parallel grid axis can
        # actually be split across TensorCores (v7x); the extra ~0.35 us per-step
        # overhead is negligible against the multi-us block DMA.
        if B >= 16:
            tb = min(tb, max(8, pl.cdiv(pl.cdiv(B, 2), 8) * 8))
        if tb >= B:
            tb = B                                                 # single full-dim block
    else:
        tb = int(batch_tile)
    grid_b = pl.cdiv(B, tb)                                        # last block may be partial

    # Pre-transpose + lane-pad the classifier parameters once (negligible cost).
    w_pad = jnp.zeros((D, Lp), jnp.float32).at[:, :L].set(weight.T.astype(jnp.float32))
    b_pad = jnp.zeros((1, Lp), jnp.float32).at[:, :L].set(
        bias.reshape(1, L).astype(jnp.float32))

    # Free contiguous reshape: dense 2D slab, no bf16 sublane-padding of a tiny S dim.
    x2d = embeddings.reshape(B, S * D)

    # Explicit scoped-VMEM limit from the actual footprint (incl. intermediates).
    vmem_needed = (2 * tb * S * D * itemsize                       # input block (x2 buffers)
                   + fixed_bytes                                   # weight + bias
                   + 2 * tb * Lp * 4                               # output block (x2 buffers)
                   + tb * D * 4 + tb * Lp * 4)                     # accumulator + logits temps
    vmem_limit = min(int(vmem_cap * 0.75),
                     max(int(vmem_needed) + (8 << 20), 16 << 20))

    # Default "parallel" is safe on every generation; CORE_PARALLEL is the opt-in
    # path that genuinely splits the batch grid across v7x's two TensorCores.
    dim_sem = (pltpu.CORE_PARALLEL,) if core_parallel else ("parallel",)

    kernel = functools.partial(_doc_classifier_kernel, seq_len=S, emb_dim=D)

    out = pl.pallas_call(
        kernel,
        out_shape=jax.ShapeDtypeStruct((B, Lp), jnp.float32),
        grid_spec=pl.GridSpec(
            grid=(grid_b,),
            in_specs=[
                pl.BlockSpec((tb, S * D), lambda i: (i, 0)),       # stream embeddings over batch
                pl.BlockSpec((D, Lp), lambda i: (0, 0)),           # weight resident
                pl.BlockSpec((1, Lp), lambda i: (0, 0)),           # bias resident
            ],
            out_specs=pl.BlockSpec((tb, Lp), lambda i: (i, 0)),
        ),
        compiler_params=pltpu.CompilerParams(
            dimension_semantics=dim_sem,
            vmem_limit_bytes=vmem_limit,
        ),
    )(x2d, w_pad, b_pad)

    return out[:, :L]


if __name__ == "__main__":
    num_labels = 2
    emb_dim = 384
    batch = 2
    seq = 8

    key = jax.random.PRNGKey(0)
    k_x, k_w, k_b = jax.random.split(key, 3)

    # Deterministic synthetic inputs / parameters (no checkpoint loading; the BERT
    # backbone is out of scope -- this kernel consumes precomputed embeddings, as
    # the module's forward does).
    embeddings = jax.random.normal(k_x, (batch, seq, emb_dim), dtype=jnp.float32)
    weight = jax.random.normal(k_w, (num_labels, emb_dim), dtype=jnp.float32) * 0.02
    bias = jax.random.normal(k_b, (num_labels,), dtype=jnp.float32) * 0.02

    # f32 path: exact reference check.
    logits = jax.block_until_ready(document_classifier_forward(embeddings, weight, bias))
    ref = embeddings.mean(axis=1) @ weight.T + bias
    assert logits.shape == (batch, num_labels)
    assert jnp.allclose(logits, ref, atol=1e-4, rtol=1e-4), "f32 mismatch vs reference"

    # bf16 ingestion path (preferred in production: halves the dominant HBM read).
    emb_bf16 = embeddings.astype(jnp.bfloat16)
    logits_bf16 = jax.block_until_ready(
        document_classifier_forward(emb_bf16, weight, bias))
    ref_bf16 = emb_bf16.astype(jnp.float32).mean(axis=1) @ weight.T + bias
    assert jnp.allclose(logits_bf16, ref_bf16, atol=2e-2, rtol=2e-2), "bf16 mismatch"

    # Batch not a multiple of the tile: exercises the partial last grid block
    # (no wrapper-side jnp.pad copy of the embedding tensor).
    b2 = 10
    emb2 = jax.random.normal(jax.random.PRNGKey(1), (b2, seq, emb_dim), dtype=jnp.float32)
    logits2 = jax.block_until_ready(
        document_classifier_forward(emb2, weight, bias, batch_tile=8))
    ref2 = emb2.mean(axis=1) @ weight.T + bias
    assert logits2.shape == (b2, num_labels)
    assert jnp.allclose(logits2, ref2, atol=1e-4, rtol=1e-4), "partial-block mismatch"

    print("KERNEL_OK")
</pallas_src>

<mosaic_0001>
module attributes {stable_mosaic.version = 11 : i64} {
  func.func @_doc_classifier_kernel(%arg0: i32, %arg1: memref<2x3072xf32, #tpu.memory_space<vmem>>, %arg2: memref<384x128xf32, #tpu.memory_space<vmem>>, %arg3: memref<1x128xf32, #tpu.memory_space<vmem>>, %arg4: memref<2x128xf32, #tpu.memory_space<vmem>>) attributes {dimension_semantics = [#tpu.dimension_semantics<parallel>], iteration_bounds = array<i64: 1>, scalar_prefetch = 0 : i64, scratch_operands = 0 : i64, tpu.core_type = #tpu.core_type<tc>, window_params = [{transform_indices = @transform_0, window_bounds = array<i64: 2, 3072>}, {pipeline_mode = #tpu.pipeline_mode<synchronous>, transform_indices = @transform_1, window_bounds = array<i64: 384, 128>}, {pipeline_mode = #tpu.pipeline_mode<synchronous>, transform_indices = @transform_2, window_bounds = array<i64: 1, 128>}, {transform_indices = @transform_3, window_bounds = array<i64: 2, 128>}]} {
    %cst = arith.constant 0.000000e+00 : f32
    %0 = vector.broadcast %cst : f32 to vector<2x384xf32>
    %c0 = arith.constant 0 : index
    %c0_0 = arith.constant 0 : index
    %1 = vector.load %arg1[%c0, %c0_0] : memref<2x3072xf32, #tpu.memory_space<vmem>>, vector<2x384xf32>
    %2 = arith.addf %0, %1 : vector<2x384xf32>
    %c0_1 = arith.constant 0 : index
    %c384 = arith.constant 384 : index
    %3 = vector.load %arg1[%c0_1, %c384] : memref<2x3072xf32, #tpu.memory_space<vmem>>, vector<2x384xf32>
    %4 = arith.addf %2, %3 : vector<2x384xf32>
    %c0_2 = arith.constant 0 : index
    %c768 = arith.constant 768 : index
    %5 = vector.load %arg1[%c0_2, %c768] : memref<2x3072xf32, #tpu.memory_space<vmem>>, vector<2x384xf32>
    %6 = arith.addf %4, %5 : vector<2x384xf32>
    %c0_3 = arith.constant 0 : index
    %c1152 = arith.constant 1152 : index
    %7 = vector.load %arg1[%c0_3, %c1152] : memref<2x3072xf32, #tpu.memory_space<vmem>>, vector<2x384xf32>
    %8 = arith.addf %6, %7 : vector<2x384xf32>
    %c0_4 = arith.constant 0 : index
    %c1536 = arith.constant 1536 : index
    %9 = vector.load %arg1[%c0_4, %c1536] : memref<2x3072xf32, #tpu.memory_space<vmem>>, vector<2x384xf32>
    %10 = arith.addf %8, %9 : vector<2x384xf32>
    %c0_5 = arith.constant 0 : index
    %c1920 = arith.constant 1920 : index
    %11 = vector.load %arg1[%c0_5, %c1920] : memref<2x3072xf32, #tpu.memory_space<vmem>>, vector<2x384xf32>
    %12 = arith.addf %10, %11 : vector<2x384xf32>
    %c0_6 = arith.constant 0 : index
    %c2304 = arith.constant 2304 : index
    %13 = vector.load %arg1[%c0_6, %c2304] : memref<2x3072xf32, #tpu.memory_space<vmem>>, vector<2x384xf32>
    %14 = arith.addf %12, %13 : vector<2x384xf32>
    %c0_7 = arith.constant 0 : index
    %c2688 = arith.constant 2688 : index
    %15 = vector.load %arg1[%c0_7, %c2688] : memref<2x3072xf32, #tpu.memory_space<vmem>>, vector<2x384xf32>
    %16 = arith.addf %14, %15 : vector<2x384xf32>
    %cst_8 = arith.constant 1.250000e-01 : f32
    %17 = vector.broadcast %cst_8 : f32 to vector<2x384xf32>
    %18 = arith.mulf %16, %17 : vector<2x384xf32>
    %c0_9 = arith.constant 0 : index
    %c0_10 = arith.constant 0 : index
    %19 = vector.load %arg2[%c0_9, %c0_10] : memref<384x128xf32, #tpu.memory_space<vmem>>, vector<384x128xf32>
    %cst_11 = arith.constant dense<0.000000e+00> : vector<2x128xf32>
    %20 = tpu.matmul %18, %19, %cst_11 {dimension_numbers = #tpu.dot_dimension_numbers<[1], [0], [0], [1], [0, 0, 1, 1], [], []>} : vector<2x384xf32>, vector<384x128xf32>, vector<2x128xf32> -> vector<2x128xf32>
    %c0_12 = arith.constant 0 : index
    %c0_13 = arith.constant 0 : index
    %21 = vector.load %arg3[%c0_12, %c0_13] : memref<1x128xf32, #tpu.memory_space<vmem>>, vector<1x128xf32>
    %22 = vector.broadcast %21 : vector<1x128xf32> to vector<2x128xf32>
    %23 = arith.addf %20, %22 : vector<2x128xf32>
    %c0_14 = arith.constant 0 : index
    %c0_15 = arith.constant 0 : index
    %24 = vector.load %arg4[%c0_14, %c0_15] : memref<2x128xf32, #tpu.memory_space<vmem>>, vector<2x128xf32>
    tpu.vector_store %arg4[%c0_14, %c0_15], %23 {strides = array<i32>} : memref<2x128xf32, #tpu.memory_space<vmem>>, vector<2x128xf32>,
    return
  }
  func.func @transform_0(%arg0: i32) -> (i32, i32) {
    %c0_i32 = arith.constant 0 : i32
    %c0_i32_0 = arith.constant 0 : i32
    return %arg0, %c0_i32 : i32, i32
  }
  func.func @transform_1(%arg0: i32) -> (i32, i32) {
    %c0_i32 = arith.constant 0 : i32
    %c0_i32_0 = arith.constant 0 : i32
    %c0_i32_1 = arith.constant 0 : i32
    return %c0_i32, %c0_i32_0 : i32, i32
  }
  func.func @transform_2(%arg0: i32) -> (i32, i32) {
    %c0_i32 = arith.constant 0 : i32
    %c0_i32_0 = arith.constant 0 : i32
    %c0_i32_1 = arith.constant 0 : i32
    return %c0_i32, %c0_i32_0 : i32, i32
  }
  func.func @transform_3(%arg0: i32) -> (i32, i32) {
    %c0_i32 = arith.constant 0 : i32
    %c0_i32_0 = arith.constant 0 : i32
    return %arg0, %c0_i32 : i32, i32
  }
}

</mosaic_0001>

<bundles_post_ra>
// kernel: tpu_custom_call.1
= control target key start
LH: loop header
LB: loop body
LE: loop exit
PB: predicated region body
PF: predicated region fallthrough
CT: control target
= control target key end

     0   :  { %8 = vsyncpa [#allocation3], 0  ;;  %s322_s0 = inlined_call_operand.hbm [shape: f32[2,3072], index: 0, kind: input, shape index: {}]   ;;  %s323_s1 = inlined_call_operand.hbm [shape: f32[384,128], index: 1, kind: input, shape index: {}]   ;;  %s324_s2 = inlined_call_operand.vmem [shape: f32[1,128], index: 2, kind: input, shape index: {}]   ;;  %s325_s3 = inlined_call_operand.hbm [shape: f32[2,128], index: 3, kind: output, shape index: {}]  }
   0x1   :  { %9 = vsyncpa [#allocation6], 0 }
   0x2   :  { %10 = vsyncpa [#allocation4], 0  ;;  %s16_s14 = sshll.u32 %s322_s0, 4  ;;  %s285_s15 = smov [#allocation2]   ;;  %s17_s14 = int_to_ptr.hbm [resolvable:$true] %s16_s14 }
   0x3   :  { %s18_s16 = sshll.u32 %s285_s15, 4  ;;  %s26_s19 = sshll.u32 %s323_s1, 4  ;;  %s19_s16 = int_to_ptr.vmem [resolvable:$true] %s18_s16  ;;  %s27_s19 = int_to_ptr.hbm [resolvable:$true] %s26_s19 }
   0x4   :  { %21 = dma.hbm_to_vmem [thread:$0]  %s17_s14, 768, %s19_s16, [#allocation3]  }
   0x5   :  { %s286_s20 = smov [#allocation5]   ;;  %s287_s22 = smov 128  }
   0x6   :  { %s28_s21 = sshll.u32 %s286_s20, 4  ;;  %s288_s23 = smov 8   ;;  %s29_s21 = int_to_ptr.vmem [resolvable:$true] %s28_s21 }
   0x7   :  { %34 = dma.hbm_to_vmem [thread:$0]  %s27_s19, 6144, %s29_s21, [#allocation6], %s287_s22, %s287_s22, %s288_s23  }
   0x8   :  { %279 = dma.done.wait [#allocation3], 768  }
   0x9   :  { %280 = vsyncadd [#allocation3], 4294966528 }
   0xa   :  { %281 = dma.done.wait [#allocation6], 6144  }
   0xb   :  { %282 = vsyncadd [#allocation6], 4294961152  ;;  %v109_v0 = vld [vmem:[#allocation5 + $0x178] sm:$0xff]  ;;  %v108_v2 = vld [vmem:[#allocation5 + $0x170] sm:$0xff]  ;;  %s289_s24 = smov [#allocation7]   ;;  %s190_s28 = sshll.u32 %s325_s3, 4  ;;  %s191_s28 = int_to_ptr.hbm [resolvable:$true] %s190_s28 }
   0xc   :  { %v77_v1 = vld [vmem:[#allocation5 + $0x78] sm:$0xff]  ;;  %162 = vmatpush.msra.mxu2 %v109_v0  ;;  %v76_v3 = vld [vmem:[#allocation5 + $0x70] sm:$0xff]  ;;  %v107_v5 = vld [vmem:[#allocation5 + $0x168] sm:$0xff]  ;;  %s188_s25 = sshll.u32 %s289_s24, 4  ;;  %s189_s25 = int_to_ptr.vmem [resolvable:$true] %s188_s25 }
   0xd   :  { %122 = vmatpush.msra.mxu0 %v77_v1  ;;  %v93_v4 = vld [vmem:[#allocation5 + $0xf8] sm:$0xff]  ;;  %v75_v6 = vld [vmem:[#allocation5 + $0x68] sm:$0xff]  ;;  %v92_v7 = vld [vmem:[#allocation5 + $0xf0] sm:$0xff] }
   0xe   :  { %142 = vmatpush.msra.mxu1 %v93_v4  ;;  %163 = vmatpush.msra.mxu2 %v108_v2  ;;  %v91_v8 = vld [vmem:[#allocation5 + $0xe8] sm:$0xff]  ;;  %v106_v9 = vld [vmem:[#allocation5 + $0x160] sm:$0xff]  ;;  %v105_v12 = vld [vmem:[#allocation5 + $0x158] sm:$0xff] }
   0xf   :  { %123 = vmatpush.msra.mxu0 %v76_v3  ;;  %v74_v10 = vld [vmem:[#allocation5 + $0x60] sm:$0xff]  ;;  %v73_v13 = vld [vmem:[#allocation5 + $0x58] sm:$0xff]  ;;  %v104_v15 = vld [vmem:[#allocation5 + $0x150] sm:$0xff] }
  0x10   :  { %143 = vmatpush.msra.mxu1 %v92_v7  ;;  %164 = vmatpush.msra.mxu2 %v107_v5  ;;  %v90_v11 = vld [vmem:[#allocation5 + $0xe0] sm:$0xff]  ;;  %v89_v14 = vld [vmem:[#allocation5 + $0xd8] sm:$0xff]  ;;  %v72_v16 = vld [vmem:[#allocation5 + $0x50] sm:$0xff] }
  0x11   :  { %124 = vmatpush.msra.mxu0 %v75_v6  ;;  %v88_v17 = vld [vmem:[#allocation5 + $0xd0] sm:$0xff]  ;;  %v103_v18 = vld [vmem:[#allocation5 + $0x148] sm:$0xff]  ;;  %v102_v21 = vld [vmem:[#allocation5 + $0x140] sm:$0xff] }
  0x12   :  { %144 = vmatpush.msra.mxu1 %v91_v8  ;;  %165 = vmatpush.msra.mxu2 %v106_v9  ;;  %v71_v19 = vld [vmem:[#allocation5 + $0x48] sm:$0xff]  ;;  %v70_v22 = vld [vmem:[#allocation5 + $0x40] sm:$0xff]  ;;  %v101_v24 = vld [vmem:[#allocation5 + $0x138] sm:$0xff] }
  0x13   :  { %125 = vmatpush.msra.mxu0 %v74_v10  ;;  %v87_v20 = vld [vmem:[#allocation5 + $0xc8] sm:$0xff]  ;;  %v86_v23 = vld [vmem:[#allocation5 + $0xc0] sm:$0xff]  ;;  %v69_v25 = vld [vmem:[#allocation5 + $0x38] sm:$0xff] }
  0x14   :  { %145 = vmatpush.msra.mxu1 %v90_v11  ;;  %166 = vmatpush.msra.mxu2 %v105_v12  ;;  %v85_v26 = vld [vmem:[#allocation5 + $0xb8] sm:$0xff]  ;;  %v45_v27 = vld [vmem:[#allocation2] sm:$0x3f]  ;;  %v51_v34 = vld [vmem:[#allocation2 + $0x12] sm:$0x3f] }
  0x15   :  { %126 = vmatpush.msra.mxu0 %v73_v13  ;;  %v47_v28 = vld [vmem:[#allocation2 + $0x6] sm:$0x3f]  ;;  %v49_v29 = vld [vmem:[#allocation2 + $0xc] sm:$0x3f]  ;;  %v99_v35 = vld [vmem:[#allocation5 + $0x128] sm:$0xff] }
  0x16   :  { %146 = vmatpush.msra.mxu1 %v89_v14  ;;  %167 = vmatpush.msra.mxu2 %v104_v15  ;;  %v100_v30 = vld [vmem:[#allocation5 + $0x130] sm:$0xff]  ;;  %v48_v32 = vadd.f32 %v47_v28, %v45_v27  ;;  %v67_v36 = vld [vmem:[#allocation5 + $0x28] sm:$0xff]  ;;  %v98_v40 = vld [vmem:[#allocation5 + $0x120] sm:$0xff] }
  0x17   :  { %127 = vmatpush.msra.mxu0 %v72_v16  ;;  %v68_v31 = vld [vmem:[#allocation5 + $0x30] sm:$0xff]  ;;  %v83_v38 = vld [vmem:[#allocation5 + $0xa8] sm:$0xff]  ;;  %v66_v41 = vld [vmem:[#allocation5 + $0x20] sm:$0xff] }
  0x18   :  { %147 = vmatpush.msra.mxu1 %v88_v17  ;;  %168 = vmatpush.msra.mxu2 %v103_v18  ;;  %v84_v33 = vld [vmem:[#allocation5 + $0xb0] sm:$0xff]  ;;  %v50_v37 = vadd.f32 %v49_v29, %v48_v32  ;;  %v53_v39 = vld [vmem:[#allocation2 + $0x18] sm:$0x3f]  ;;  %v82_v43 = vld [vmem:[#allocation5 + $0xa0] sm:$0xff] }
  0x19   :  { %128 = vmatpush.msra.mxu0 %v71_v19  ;;  %v55_v44 = vld [vmem:[#allocation2 + $0x1e] sm:$0x3f]  ;;  %v97_v45 = vld [vmem:[#allocation5 + $0x118] sm:$0xff]  ;;  %v94_v59 = vld [vmem:[#allocation5 + $0x100] sm:$0xff] }
  0x1a   :  { %148 = vmatpush.msra.mxu1 %v87_v20  ;;  %169 = vmatpush.msra.mxu2 %v102_v21  ;;  %v52_v42 = vadd.f32 %v51_v34, %v50_v37  ;;  %v65_v46 = vld [vmem:[#allocation5 + $0x18] sm:$0xff]  ;;  %v96_v50 = vld [vmem:[#allocation5 + $0x110] sm:$0xff]  ;;  %v95_v55 = vld [vmem:[#allocation5 + $0x108] sm:$0xff] }
  0x1b   :  { %129 = vmatpush.msra.mxu0 %v70_v22  ;;  %v81_v48 = vld [vmem:[#allocation5 + $0x98] sm:$0xff]  ;;  %v64_v51 = vld [vmem:[#allocation5 + $0x10] sm:$0xff]  ;;  %v63_v56 = vld [vmem:[#allocation5 + $0x8] sm:$0xff] }
  0x1c   :  { %149 = vmatpush.msra.mxu1 %v86_v23  ;;  %170 = vmatpush.msra.mxu2 %v101_v24  ;;  %v54_v47 = vadd.f32 %v53_v39, %v52_v42  ;;  %v57_v49 = vld [vmem:[#allocation2 + $0x24] sm:$0x3f]  ;;  %v59_v54 = vld [vmem:[#allocation2 + $0x2a] sm:$0x3f]  ;;  %v79_v58 = vld [vmem:[#allocation5 + $0x88] sm:$0xff] }
  0x1d   :  { %130 = vmatpush.msra.mxu0 %v69_v25  ;;  %v80_v53 = vld [vmem:[#allocation5 + $0x90] sm:$0xff]  ;;  %v62_v61 = vld [vmem:[#allocation5] sm:$0xff]  ;;  %v206_v3 = vld [vmem:[%s324_s2] ss:$0 sm:$0xff] }
  0x1e   :  { %150 = vmatpush.msra.mxu1 %v85_v26  ;;  %171 = vmatpush.msra.mxu2 %v100_v30  ;;  %v56_v52 = vadd.f32 %v55_v44, %v54_v47  ;;  %v78_v62 = vld [vmem:[#allocation5 + $0x80] sm:$0xff] }
  0x1f   :  { %131 = vmatpush.msra.mxu0 %v68_v31 }
  0x20   :  { %151 = vmatpush.msra.mxu1 %v84_v33  ;;  %172 = vmatpush.msra.mxu2 %v99_v35  ;;  %v58_v57 = vadd.f32 %v57_v49, %v56_v52 }
  0x21   :  { %132 = vmatpush.msra.mxu0 %v67_v36 }
  0x22   :  { %152 = vmatpush.msra.mxu1 %v83_v38  ;;  %173 = vmatpush.msra.mxu2 %v98_v40  ;;  %v60_v60 = vadd.f32 %v59_v54, %v58_v57 }
  0x23   :  { %133 = vmatpush.msra.mxu0 %v66_v41 }
  0x24   :  { %153 = vmatpush.msra.mxu1 %v82_v43  ;;  %174 = vmatpush.msra.mxu2 %v97_v45  ;;  %v61_v63 = vmul.f32 0.125, %v60_v60 }
  0x25   :  { %134 = vmatpush.msra.mxu0 %v65_v46 }
  0x26   :  { %154 = vmatpush.msra.mxu1 %v81_v48  ;;  %175 = vmatpush.msra.mxu2 %v96_v50  ;;  %115 = vst [vmem:[#allocation1] ss:$4 sm:$0xff] %v61_v63 }
  0x27   :  { %135 = vmatpush.msra.mxu0 %v64_v51 }
  0x28   :  { %155 = vmatpush.msra.mxu1 %v80_v53  ;;  %176 = vmatpush.msra.mxu2 %v95_v55 }
  0x29   :  { %136 = vmatpush.msra.mxu0 %v63_v56 }
  0x2a   :  { %156 = vmatpush.msra.mxu1 %v79_v58  ;;  %177 = vmatpush.msra.mxu2 %v94_v59 }
  0x2b   :  { %137 = vmatpush.msra.mxu0 %v62_v61 }
  0x2c   :  { %157 = vmatpush.msra.mxu1 %v78_v62 }
  0x2d   :  { %v118_v0 = vld.sshfl [vmem:[#allocation1 + $0x10] sm:$0xff pattern:$0x73625140]  ;;  %v116_v1 = vld.sshfl [vmem:[#allocation1] sm:$0xff pattern:$0x73625140] }
  0x2e   :  { %178 = vmatmul.f32.vlgmr.msra.gmra.mxu2 %v118_v0  ;;  %138 = vmatmul.f32.vlgmr.msra.gmra.mxu0 %v116_v1  ;;  %v117_v2 = vld.sshfl [vmem:[#allocation1 + $0x8] sm:$0xff pattern:$0x73625140] }
  0x2f   :  { %158 = vmatmul.f32.vlgmr.msra.gmra.mxu1 %v117_v2 }
  0xab   :  { %v139_v4 = vpop.f32.mrf.mxu0 }
  0xac   :  { %v140_v5 = vadd.f32 %v206_v3, %v139_v4  ;;  %v159_v6 = vpop.f32.mrf.mxu1 }
  0xae   :  { %v160_v7 = vadd.f32 %v159_v6, %v140_v5 }
  0xb1   :  { %v179_v8 = vpop.f32.mrf.mxu2 }
  0xb2   :  { %v180_v9 = vadd.f32 %v179_v8, %v160_v7 }
  0xb4   :  { %182 = vst [vmem:[#allocation7] sm:$0x3] %v180_v9 }
  0xb5   :  { %193 = dma.vmem_to_hbm [thread:$0]  %s189_s25, 32, %s191_s28, [#allocation4]  }
  0xb6   :  { %283 = dma.done.wait [#allocation4], 32  }
  0xb7   :  { %284 = vsyncadd [#allocation4], 4294967264 }
  0xb8   :  { %198 = vsyncpa [#allocation3], 1 }
  0xb9   :  { %199 = vsyncpa [#allocation6], 1 }
  0xba   :  { %200 = vsyncpa [#allocation4], 1 }

</bundles_post_ra>
